<compile_context>
chip_gen: v5e
topology: v5e:2x2
jax: 0.10.0
libtpu: 0.0.40
codegen_flags: <defaults>
</compile_context>

<pallas_src>
import jax
import jax.numpy as jnp
from jax.experimental import pallas as pl
from jax.experimental.pallas import tpu as pltpu


def attention_kernel(enc_ref, d_ref, mask_ref,
                     w1_ref, b1_ref, we_ref, be_ref, ws_ref, bs_ref,
                     ctx_ref, score_ref):
    Bt, S, H2 = enc_ref.shape
    Hp = w1_ref.shape[1]                       # lane-padded hidden size

    # ---- encoder path: two bf16 MXU matmuls with f32 accumulation on the ----
    # ---- flattened (Bt*S, .) tile (S sublane-padded -> reshape is a view) ----
    enc_flat = enc_ref[...].reshape(Bt * S, H2)                          # bf16
    enc = jnp.dot(enc_flat, w1_ref[...],
                  preferred_element_type=jnp.float32) + b1_ref[...]      # (Bt*S, Hp) f32
    e = jnp.dot(jnp.maximum(enc, 0.0).astype(jnp.bfloat16), we_ref[...],
                preferred_element_type=jnp.float32) + be_ref[...]        # (Bt*S, Hp) f32
    enc3 = enc.reshape(Bt, S, Hp)

    # ---- add precomputed decoder term (broadcast over S), tanh (f32 EUP) ----
    score_h = jnp.tanh(e.reshape(Bt, S, Hp) + d_ref[...])                # (Bt, S, Hp)

    # ---- score projection Linear(H -> 1): batched M=1 MXU matmul that lands
    # ---- directly in the lane-dense (Bt, 1, S) layout (no XLU transpose).
    ws_b = jnp.broadcast_to(ws_ref[...], (Bt, 1, Hp))                    # (Bt, 1, Hp)
    s = jnp.einsum('bqh,bsh->bqs', ws_b, score_h,
                   preferred_element_type=jnp.float32) + bs_ref[...]     # (Bt, 1, S)

    # ---- masked softmax over the sequence (lane) axis.  Padded S lanes carry
    # ---- mask==0 and softmax to exactly 0; all-zero real mask rows give NaN,
    # ---- matching the PyTorch module.
    s = jnp.where(mask_ref[...] == 0, -jnp.inf, s)                       # (Bt, 1, S)
    m = jnp.max(s, axis=-1, keepdims=True)
    p = jnp.exp(s - m)
    sm = p / jnp.sum(p, axis=-1, keepdims=True)                          # (Bt, 1, S)
    score_ref[...] = sm

    # ---- context: bmm(enc^T, score) == (Bt,1,S) @ (Bt,S,Hp) on the MXU ----
    ctx_ref[...] = jnp.einsum('bqs,bsh->bqh', sm, enc3,
                              preferred_element_type=jnp.float32)        # (Bt, 1, Hp)


def _round_up(x, m):
    return ((x + m - 1) // m) * m


def _tpu_generation():
    try:
        kind = jax.devices()[0].device_kind.lower()
    except Exception:
        return None
    if "v7" in kind or "7x" in kind:
        return 7
    if "v6" in kind:
        return 6
    if "v5" in kind:
        return 5
    return None


def _gen_config(gen):
    """Generation-aware sizing (perf review): v5e/v6e have 128 MiB VMEM and
    benefit from big blocks; v7x has 64 MiB per TC and 2 TensorCores so the
    block budget is tighter, resident weights are single-buffered and >= 2
    grid steps are kept so the parallel batch axis splits across cores."""
    if gen == 7:
        return dict(block_budget=5 << 20, vmem_limit=40 << 20, m_gran=256,
                    single_buffer_weights=True, two_steps_min=True)
    if gen == 6:
        return dict(block_budget=14 << 20, vmem_limit=96 << 20, m_gran=256,
                    single_buffer_weights=False, two_steps_min=False)
    if gen == 5:
        return dict(block_budget=14 << 20, vmem_limit=96 << 20, m_gran=128,
                    single_buffer_weights=False, two_steps_min=False)
    # unknown generation -> conservative (v7x-safe) defaults
    return dict(block_budget=6 << 20, vmem_limit=32 << 20, m_gran=256,
                single_buffer_weights=False, two_steps_min=False)


def _choose_block_b(B, Sp, H2, Hp, cfg):
    """Largest batch block whose full working set (double-buffered bf16 enc
    input tile + live f32 intermediates enc/e/score_h + output blocks) fits
    the per-generation budget, preferring Bt*Sp that is a multiple of the MXU
    M granularity (256 on v6e/v7x, 128 on v5e)."""
    def block_bytes(bt):
        rows = bt * Sp
        enc_in = 2 * rows * H2 * 2            # bf16 enc tile, double-buffered
        inter = 3 * rows * Hp * 4             # enc, e, score_h (f32, live together)
        outs = 2 * bt * (Hp + Sp) * 4         # ctx + score blocks, double-buffered
        return enc_in + inter + outs

    fits = [bt for bt in range(1, B + 1)
            if block_bytes(bt) <= cfg["block_budget"]] or [1]
    aligned = [bt for bt in fits if (bt * Sp) % cfg["m_gran"] == 0]
    bt = max(aligned) if aligned else max(fits)
    # v7x: keep >= 2 grid steps (only when each half still fills the MXU M dim)
    if cfg["two_steps_min"] and (B // 2) * Sp >= cfg["m_gran"]:
        bt = min(bt, max(1, B // 2))
    return bt


@jax.jit
def attention_pallas(enc_output, dec_hidden, mask, params):
    B, S, H2 = enc_output.shape
    H = H2 // 2
    (w1, b1, we, be, wd1, bd1, wd2, bd2, ws, bs) = params

    enc_output = enc_output.astype(jnp.float32)
    dec_hidden = dec_hidden.astype(jnp.float32)

    cfg = _gen_config(_tpu_generation())

    # Hoist the decoder MLP out of the kernel: one batched matmul for all B.
    d = jnp.maximum(dec_hidden @ wd1 + bd1, 0.0) @ wd2 + bd2             # (B, H)

    # ---- padding / layout hygiene ---------------------------------------
    Hp = _round_up(H, 128)                      # hidden -> full 128 lanes
    # S -> 128 lanes when cheap (lane-dense mask/score, full MXU M tiles),
    # otherwise 16 sublanes so the bf16 (Bt,S,H2)->(Bt*S,H2) flatten is a view.
    Sp = _round_up(S, 128) if S <= 256 else _round_up(S, 16)

    Bt = _choose_block_b(B, Sp, H2, Hp, cfg)
    Bp = _round_up(B, Bt)
    nb = Bp // Bt

    # encoder input: pad (batch, S), cast to bf16 for the MXU.
    encp = jnp.pad(enc_output,
                   ((0, Bp - B), (0, Sp - S), (0, 0))).astype(jnp.bfloat16)

    pad_h = Hp - H
    # bf16 operands for the two encoder matmuls; biases stay f32 (post-acc).
    w1p = jnp.pad(w1, ((0, 0), (0, pad_h))).astype(jnp.bfloat16)         # (H2, Hp)
    wep = jnp.pad(we, ((0, pad_h), (0, pad_h))).astype(jnp.bfloat16)     # (Hp, Hp)
    b1p = jnp.pad(b1, ((0, 0), (0, pad_h)))                              # (1, Hp)
    bep = jnp.pad(be, ((0, 0), (0, pad_h)))                              # (1, Hp)
    ws_row = jnp.pad(ws.reshape(1, H), ((0, 0), (0, pad_h)))             # (1, Hp)
    bs11 = bs.reshape(1, 1)

    # decoder term, lane-padded: (Bp, 1, Hp)
    d3 = jnp.pad(d, ((0, Bp - B), (0, pad_h))).reshape(Bp, 1, Hp)

    # mask: padded S lanes -> 0 (softmax weight exactly 0), padded batch rows
    # -> 1 (keeps the throwaway rows NaN-free); lane-dense (Bp, 1, Sp).
    mask3 = jnp.pad(mask.astype(jnp.int32), ((0, 0), (0, Sp - S)))
    mask3 = jnp.pad(mask3, ((0, Bp - B), (0, 0)),
                    constant_values=1).reshape(Bp, 1, Sp)

    # Resident weights (constant index_map).  On v7x single-buffer them so the
    # default double-buffering does not eat the 64 MiB/TC VMEM at larger H.
    wkw = {"pipeline_mode": pl.Buffered(1)} if cfg["single_buffer_weights"] else {}

    def wspec(shape):
        return pl.BlockSpec(shape, lambda i: (0,) * len(shape), **wkw)

    ctx, score = pl.pallas_call(
        attention_kernel,
        out_shape=(jax.ShapeDtypeStruct((Bp, 1, Hp), jnp.float32),
                   jax.ShapeDtypeStruct((Bp, 1, Sp), jnp.float32)),
        grid_spec=pltpu.PrefetchScalarGridSpec(
            num_scalar_prefetch=0,
            grid=(nb,),
            in_specs=[
                pl.BlockSpec((Bt, Sp, H2), lambda i: (i, 0, 0)),  # enc_output (bf16)
                pl.BlockSpec((Bt, 1, Hp), lambda i: (i, 0, 0)),   # dec_wts(dec_hidden)
                pl.BlockSpec((Bt, 1, Sp), lambda i: (i, 0, 0)),   # mask (lane-dense)
                wspec((H2, Hp)), wspec((1, Hp)),                  # enc_dim_changer
                wspec((Hp, Hp)), wspec((1, Hp)),                  # enc_wts
                wspec((1, Hp)), wspec((1, 1)),                    # score_wts row + bias
            ],
            out_specs=(
                pl.BlockSpec((Bt, 1, Hp), lambda i: (i, 0, 0)),   # context
                pl.BlockSpec((Bt, 1, Sp), lambda i: (i, 0, 0)),   # softmax scores
            ),
        ),
        compiler_params=pltpu.CompilerParams(
            dimension_semantics=("parallel",),        # batch blocks shard across TCs
            vmem_limit_bytes=cfg["vmem_limit"]),
    )(encp, d3, mask3, w1p, b1p, wep, bep, ws_row, bs11)

    return ctx[:B, 0, :H], score[:B, 0, :S].reshape(B, S, 1)


def attention_reference(enc_output, dec_hidden, mask, params):
    """Plain-JAX reference mirroring the PyTorch forward (pure f32)."""
    (w1, b1, we, be, wd1, bd1, wd2, bd2, ws, bs) = params
    enc = enc_output @ w1 + b1[0]                                   # (B, S, H)
    e = jnp.maximum(enc, 0.0) @ we + be[0]                          # (B, S, H)
    d = jnp.maximum(dec_hidden @ wd1 + bd1[0], 0.0) @ wd2 + bd2[0]  # (B, H)
    score = jnp.tanh(e + d[:, None, :])                             # (B, S, H)
    score = score @ ws + bs[0]                                      # (B, S, 1)
    score = jnp.where(mask[:, :, None] == 0, -jnp.inf, score)
    score = jax.nn.softmax(score, axis=1)                           # (B, S, 1)
    ctx = jnp.einsum("bhs,bsk->bhk",
                     jnp.transpose(enc, (0, 2, 1)), score)[..., 0]  # (B, H)
    return ctx, score


def init_params(key, H):
    def linear(k, fan_in, fan_out):
        k1, k2 = jax.random.split(k)
        bound = 1.0 / jnp.sqrt(jnp.float32(fan_in))
        w = jax.random.uniform(k1, (fan_in, fan_out), jnp.float32, -bound, bound)
        b = jax.random.uniform(k2, (1, fan_out), jnp.float32, -bound, bound)
        return w, b

    keys = jax.random.split(key, 5)
    w1, b1 = linear(keys[0], 2 * H, H)     # enc_dim_changer
    we, be = linear(keys[1], H, H)         # enc_wts
    wd1, bd1 = linear(keys[2], H, H)       # dec_wts[0]
    wd2, bd2 = linear(keys[3], H, H)       # dec_wts[2]
    ws, bs = linear(keys[4], H, 1)         # score_wts
    return (w1, b1, we, be, wd1, bd1, wd2, bd2, ws, bs)


if __name__ == "__main__":
    B, S, H = 2, 8, 32

    key = jax.random.PRNGKey(0)
    k_enc, k_dec, k_par = jax.random.split(key, 3)

    enc_output = jax.random.normal(k_enc, (B, S, 2 * H), jnp.float32)
    dec_hidden = jax.random.normal(k_dec, (B, H), jnp.float32)
    # mask: batch 0 fully valid, batch 1 has last 3 positions padded
    # (like the PyTorch module, an all-zero mask row would produce NaNs)
    mask = jnp.ones((B, S), jnp.int32).at[1, S - 3:].set(0)

    params = init_params(k_par, H)

    ctx, score = attention_pallas(enc_output, dec_hidden, mask, params)
    jax.block_until_ready((ctx, score))

    ctx_ref, score_ref = attention_reference(enc_output, dec_hidden, mask, params)
    # bf16 MXU operands with f32 accumulation: tolerance loosened vs pure f32.
    assert jnp.allclose(ctx, ctx_ref, atol=2e-2, rtol=2e-2), "context mismatch"
    assert jnp.allclose(score, score_ref, atol=2e-2, rtol=2e-2), "score mismatch"

    print("KERNEL_OK")
</pallas_src>

<mosaic_0001>
module attributes {stable_mosaic.version = 11 : i64} {
  func.func @attention_kernel(%arg0: i32, %arg1: memref<2x128x64xbf16, #tpu.memory_space<vmem>>, %arg2: memref<2x1x128xf32, #tpu.memory_space<vmem>>, %arg3: memref<2x1x128xi32, #tpu.memory_space<vmem>>, %arg4: memref<64x128xbf16, #tpu.memory_space<vmem>>, %arg5: memref<1x128xf32, #tpu.memory_space<vmem>>, %arg6: memref<128x128xbf16, #tpu.memory_space<vmem>>, %arg7: memref<1x128xf32, #tpu.memory_space<vmem>>, %arg8: memref<1x128xf32, #tpu.memory_space<vmem>>, %arg9: memref<1x1xf32, #tpu.memory_space<vmem>>, %arg10: memref<2x1x128xf32, #tpu.memory_space<vmem>>, %arg11: memref<2x1x128xf32, #tpu.memory_space<vmem>>) attributes {dimension_semantics = [#tpu.dimension_semantics<parallel>], iteration_bounds = array<i64: 1>, scalar_prefetch = 0 : i64, scratch_operands = 0 : i64, tpu.core_type = #tpu.core_type<tc>, window_params = [{transform_indices = @transform_0, window_bounds = array<i64: 2, 128, 64>}, {transform_indices = @transform_1, window_bounds = array<i64: 2, 1, 128>}, {transform_indices = @transform_2, window_bounds = array<i64: 2, 1, 128>}, {pipeline_mode = #tpu.pipeline_mode<synchronous>, transform_indices = @transform_3, window_bounds = array<i64: 64, 128>}, {pipeline_mode = #tpu.pipeline_mode<synchronous>, transform_indices = @transform_4, window_bounds = array<i64: 1, 128>}, {pipeline_mode = #tpu.pipeline_mode<synchronous>, transform_indices = @transform_5, window_bounds = array<i64: 128, 128>}, {pipeline_mode = #tpu.pipeline_mode<synchronous>, transform_indices = @transform_6, window_bounds = array<i64: 1, 128>}, {pipeline_mode = #tpu.pipeline_mode<synchronous>, transform_indices = @transform_7, window_bounds = array<i64: 1, 128>}, {pipeline_mode = #tpu.pipeline_mode<synchronous>, transform_indices = @transform_8, window_bounds = array<i64: 1, 1>}, {transform_indices = @transform_9, window_bounds = array<i64: 2, 1, 128>}, {transform_indices = @transform_10, window_bounds = array<i64: 2, 1, 128>}]} {
    %c0 = arith.constant 0 : index
    %c0_0 = arith.constant 0 : index
    %c0_1 = arith.constant 0 : index
    %0 = vector.load %arg1[%c0, %c0_0, %c0_1] : memref<2x128x64xbf16, #tpu.memory_space<vmem>>, vector<2x128x64xbf16>
    %1 = vector.shape_cast %0 : vector<2x128x64xbf16> to vector<256x64xbf16>
    %c0_2 = arith.constant 0 : index
    %c0_3 = arith.constant 0 : index
    %2 = vector.load %arg4[%c0_2, %c0_3] : memref<64x128xbf16, #tpu.memory_space<vmem>>, vector<64x128xbf16>
    %cst = arith.constant dense<0.000000e+00> : vector<256x128xf32>
    %3 = tpu.matmul %1, %2, %cst {dimension_numbers = #tpu.dot_dimension_numbers<[1], [0], [0], [1], [0, 0, 1, 1], [], []>} : vector<256x64xbf16>, vector<64x128xbf16>, vector<256x128xf32> -> vector<256x128xf32>
    %c0_4 = arith.constant 0 : index
    %c0_5 = arith.constant 0 : index
    %4 = vector.load %arg5[%c0_4, %c0_5] : memref<1x128xf32, #tpu.memory_space<vmem>>, vector<1x128xf32>
    %5 = vector.broadcast %4 : vector<1x128xf32> to vector<256x128xf32>
    %6 = arith.addf %3, %5 : vector<256x128xf32>
    %cst_6 = arith.constant 0.000000e+00 : f32
    %7 = vector.broadcast %cst_6 : f32 to vector<256x128xf32>
    %8 = arith.maximumf %6, %7 : vector<256x128xf32>
    %9 = arith.truncf %8 : vector<256x128xf32> to vector<256x128xbf16>
    %c0_7 = arith.constant 0 : index
    %c0_8 = arith.constant 0 : index
    %10 = vector.load %arg6[%c0_7, %c0_8] : memref<128x128xbf16, #tpu.memory_space<vmem>>, vector<128x128xbf16>
    %cst_9 = arith.constant dense<0.000000e+00> : vector<256x128xf32>
    %11 = tpu.matmul %9, %10, %cst_9 {dimension_numbers = #tpu.dot_dimension_numbers<[1], [0], [0], [1], [0, 0, 1, 1], [], []>} : vector<256x128xbf16>, vector<128x128xbf16>, vector<256x128xf32> -> vector<256x128xf32>
    %c0_10 = arith.constant 0 : index
    %c0_11 = arith.constant 0 : index
    %12 = vector.load %arg7[%c0_10, %c0_11] : memref<1x128xf32, #tpu.memory_space<vmem>>, vector<1x128xf32>
    %13 = vector.broadcast %12 : vector<1x128xf32> to vector<256x128xf32>
    %14 = arith.addf %11, %13 : vector<256x128xf32>
    %15 = vector.shape_cast %6 : vector<256x128xf32> to vector<2x128x128xf32>
    %16 = vector.shape_cast %14 : vector<256x128xf32> to vector<2x128x128xf32>
    %c0_12 = arith.constant 0 : index
    %c0_13 = arith.constant 0 : index
    %c0_14 = arith.constant 0 : index
    %17 = vector.load %arg2[%c0_12, %c0_13, %c0_14] : memref<2x1x128xf32, #tpu.memory_space<vmem>>, vector<2x1x128xf32>
    %18 = vector.broadcast %17 : vector<2x1x128xf32> to vector<2x128x128xf32>
    %19 = arith.addf %16, %18 : vector<2x128x128xf32>
    %20 = math.tanh %19 : vector<2x128x128xf32>
    %c0_15 = arith.constant 0 : index
    %c0_16 = arith.constant 0 : index
    %21 = vector.load %arg8[%c0_15, %c0_16] : memref<1x128xf32, #tpu.memory_space<vmem>>, vector<1x128xf32>
    %22 = vector.shape_cast %21 : vector<1x128xf32> to vector<1x1x128xf32>
    %23 = vector.broadcast %22 : vector<1x1x128xf32> to vector<2x1x128xf32>
    "tpu.trace_start"() <{level = 10 : i32, message = "bqh,bsh->bqs"}> : () -> ()
    %cst_17 = arith.constant dense<0.000000e+00> : vector<2x1x128xf32>
    %24 = tpu.matmul %23, %20, %cst_17 {dimension_numbers = #tpu.dot_dimension_numbers<[2], [2], [1], [1], [0, 0, 0, 1, 1, 1], [0], [0]>} : vector<2x1x128xf32>, vector<2x128x128xf32>, vector<2x1x128xf32> -> vector<2x1x128xf32>
    "tpu.trace_stop"() : () -> ()
    %c0_18 = arith.constant 0 : index
    %c0_19 = arith.constant 0 : index
    %25 = vector.load %arg9[%c0_18, %c0_19] : memref<1x1xf32, #tpu.memory_space<vmem>>, vector<1x1xf32>
    %26 = vector.shape_cast %25 : vector<1x1xf32> to vector<1x1x1xf32>
    %27 = vector.broadcast %26 : vector<1x1x1xf32> to vector<2x1x128xf32>
    %28 = arith.addf %24, %27 : vector<2x1x128xf32>
    %c0_20 = arith.constant 0 : index
    %c0_21 = arith.constant 0 : index
    %c0_22 = arith.constant 0 : index
    %29 = vector.load %arg3[%c0_20, %c0_21, %c0_22] : memref<2x1x128xi32, #tpu.memory_space<vmem>>, vector<2x1x128xi32>
    %c0_i32 = arith.constant 0 : i32
    %30 = vector.broadcast %c0_i32 : i32 to vector<2x1x128xi32>
    %31 = arith.cmpi eq, %29, %30 : vector<2x1x128xi32>
    %cst_23 = arith.constant 0xFF800000 : f32
    %32 = vector.broadcast %cst_23 : f32 to vector<2x1x128xf32>
    %33 = arith.select %31, %32, %28 : vector<2x1x128xi1>, vector<2x1x128xf32>
    %cst_24 = arith.constant dense<0xFF800000> : vector<2x1xf32>
    %34 = vector.multi_reduction <maximumf>, %33, %cst_24 [2] : vector<2x1x128xf32> to vector<2x1xf32>
    %35 = vector.shape_cast %34 : vector<2x1xf32> to vector<2x1x1xf32>
    %36 = vector.broadcast %35 : vector<2x1x1xf32> to vector<2x1x128xf32>
    %37 = arith.subf %33, %36 : vector<2x1x128xf32>
    %38 = math.exp %37 : vector<2x1x128xf32>
    %cst_25 = arith.constant dense<0.000000e+00> : vector<2x1xf32>
    %39 = vector.multi_reduction <add>, %38, %cst_25 [2] : vector<2x1x128xf32> to vector<2x1xf32>
    %40 = vector.shape_cast %39 : vector<2x1xf32> to vector<2x1x1xf32>
    %41 = vector.broadcast %40 : vector<2x1x1xf32> to vector<2x1x128xf32>
    %42 = arith.divf %38, %41 : vector<2x1x128xf32>
    %c0_26 = arith.constant 0 : index
    %c0_27 = arith.constant 0 : index
    %c0_28 = arith.constant 0 : index
    %43 = vector.load %arg11[%c0_26, %c0_27, %c0_28] : memref<2x1x128xf32, #tpu.memory_space<vmem>>, vector<2x1x128xf32>
    tpu.vector_store %arg11[%c0_26, %c0_27, %c0_28], %42 {strides = array<i32>} : memref<2x1x128xf32, #tpu.memory_space<vmem>>, vector<2x1x128xf32>,
    "tpu.trace_start"() <{level = 10 : i32, message = "bqs,bsh->bqh"}> : () -> ()
    %cst_29 = arith.constant dense<0.000000e+00> : vector<2x1x128xf32>
    %44 = tpu.matmul %42, %15, %cst_29 {dimension_numbers = #tpu.dot_dimension_numbers<[2], [1], [1], [2], [0, 0, 0, 1, 1, 2], [0], [0]>} : vector<2x1x128xf32>, vector<2x128x128xf32>, vector<2x1x128xf32> -> vector<2x1x128xf32>
    "tpu.trace_stop"() : () -> ()
    %c0_30 = arith.constant 0 : index
    %c0_31 = arith.constant 0 : index
    %c0_32 = arith.constant 0 : index
    %45 = vector.load %arg10[%c0_30, %c0_31, %c0_32] : memref<2x1x128xf32, #tpu.memory_space<vmem>>, vector<2x1x128xf32>
    tpu.vector_store %arg10[%c0_30, %c0_31, %c0_32], %44 {strides = array<i32>} : memref<2x1x128xf32, #tpu.memory_space<vmem>>, vector<2x1x128xf32>,
    return
  }
  func.func @transform_0(%arg0: i32) -> (i32, i32, i32) {
    %c0_i32 = arith.constant 0 : i32
    %c0_i32_0 = arith.constant 0 : i32
    %c0_i32_1 = arith.constant 0 : i32
    return %arg0, %c0_i32, %c0_i32_0 : i32, i32, i32
  }
  func.func @transform_1(%arg0: i32) -> (i32, i32, i32) {
    %c0_i32 = arith.constant 0 : i32
    %c0_i32_0 = arith.constant 0 : i32
    %c0_i32_1 = arith.constant 0 : i32
    return %arg0, %c0_i32, %c0_i32_0 : i32, i32, i32
  }
  func.func @transform_2(%arg0: i32) -> (i32, i32, i32) {
    %c0_i32 = arith.constant 0 : i32
    %c0_i32_0 = arith.constant 0 : i32
    %c0_i32_1 = arith.constant 0 : i32
    return %arg0, %c0_i32, %c0_i32_0 : i32, i32, i32
  }
  func.func @transform_3(%arg0: i32) -> (i32, i32) {
    %c0_i32 = arith.constant 0 : i32
    %c0_i32_0 = arith.constant 0 : i32
    %c0_i32_1 = arith.constant 0 : i32
    return %c0_i32, %c0_i32_0 : i32, i32
  }
  func.func @transform_4(%arg0: i32) -> (i32, i32) {
    %c0_i32 = arith.constant 0 : i32
    %c0_i32_0 = arith.constant 0 : i32
    %c0_i32_1 = arith.constant 0 : i32
    return %c0_i32, %c0_i32_0 : i32, i32
  }
  func.func @transform_5(%arg0: i32) -> (i32, i32) {
    %c0_i32 = arith.constant 0 : i32
    %c0_i32_0 = arith.constant 0 : i32
    %c0_i32_1 = arith.constant 0 : i32
    return %c0_i32, %c0_i32_0 : i32, i32
  }
  func.func @transform_6(%arg0: i32) -> (i32, i32) {
    %c0_i32 = arith.constant 0 : i32
    %c0_i32_0 = arith.constant 0 : i32
    %c0_i32_1 = arith.constant 0 : i32
    return %c0_i32, %c0_i32_0 : i32, i32
  }
  func.func @transform_7(%arg0: i32) -> (i32, i32) {
    %c0_i32 = arith.constant 0 : i32
    %c0_i32_0 = arith.constant 0 : i32
    %c0_i32_1 = arith.constant 0 : i32
    return %c0_i32, %c0_i32_0 : i32, i32
  }
  func.func @transform_8(%arg0: i32) -> (i32, i32) {
    %c0_i32 = arith.constant 0 : i32
    %c0_i32_0 = arith.constant 0 : i32
    %c0_i32_1 = arith.constant 0 : i32
    return %c0_i32, %c0_i32_0 : i32, i32
  }
  func.func @transform_9(%arg0: i32) -> (i32, i32, i32) {
    %c0_i32 = arith.constant 0 : i32
    %c0_i32_0 = arith.constant 0 : i32
    %c0_i32_1 = arith.constant 0 : i32
    return %arg0, %c0_i32, %c0_i32_0 : i32, i32, i32
  }
  func.func @transform_10(%arg0: i32) -> (i32, i32, i32) {
    %c0_i32 = arith.constant 0 : i32
    %c0_i32_0 = arith.constant 0 : i32
    %c0_i32_1 = arith.constant 0 : i32
    return %arg0, %c0_i32, %c0_i32_0 : i32, i32, i32
  }
}

</mosaic_0001>

<bundles_post_ra>
// kernel: attention_pallas.1
= control target key start
LH: loop header
LB: loop body
LE: loop exit
PB: predicated region body
PF: predicated region fallthrough
CT: control target
= control target key end

     0   :  { %s1518_s0 = inlined_call_operand.vmem [shape: bf16[2,128,64], index: 0, kind: input, shape index: {}]   ;;  %s1519_s1 = inlined_call_operand.vmem [shape: f32[2,1,128], index: 1, kind: input, shape index: {}]   ;;  %s1520_s2 = inlined_call_operand.vmem [shape: s32[2,1,128], index: 2, kind: input, shape index: {}]   ;;  %s1521_s3 = inlined_call_operand.vmem [shape: bf16[64,128], index: 3, kind: input, shape index: {}]   ;;  %s1522_s4 = inlined_call_operand.vmem [shape: f32[1,128], index: 4, kind: input, shape index: {}]   ;;  %s1523_s5 = inlined_call_operand.vmem [shape: bf16[128,128], index: 5, kind: input, shape index: {}]   ;;  %s1524_s6 = inlined_call_operand.vmem [shape: f32[1,128], index: 6, kind: input, shape index: {}]   ;;  %s1525_s7 = inlined_call_operand.vmem [shape: f32[1,128], index: 7, kind: input, shape index: {}]   ;;  %s1526_s8 = inlined_call_operand.<no memory space> [shape: f32[1,1], index: 8, kind: input, shape index: {}]   ;;  %s1527_s9 = inlined_call_operand.hbm [shape: f32[2,1,128], index: 9, kind: output, shape index: {0}]   ;;  %s1528_s10 = inlined_call_operand.vmem [shape: f32[2,1,128], index: 10, kind: output, shape index: {1}]  }
   0x1   :  { %v16_v0 = vstv %s1526_s8 }
   0x2   :  { %17 = vst [vmem:[#allocation2] sm:$0x1] %v16_v0 }
   0x3   :  { %v917_v1 = vld [vmem:[%s1521_s3 + $0x18] sm:$0xff]  ;;  %v916_v2 = vld [vmem:[%s1521_s3 + $0x10] sm:$0xff] }
   0x4   :  { %239 = vmatpush.bf16.msra.mxu0 %v917_v1  ;;  %926 = vmatpush.bf16.msra.mxu3 %v917_v1 }
   0x5   :  { %18 = vsyncpa [#allocation4], 0  ;;  %v915_v3 = vld [vmem:[%s1521_s3 + $0x8] sm:$0xff]  ;;  %v914_v4 = vld [vmem:[%s1521_s3] sm:$0xff]  ;;  %vm186_vm0 = vcmask 523264   ;;  %vm655_vm2 = vcmask 1040384  }
   0x6   :  { %v898_v5 = vld [vmem:[%s1518_s0] sm:$0xff]  ;;  %v908_v6 = vld [vmem:[%s1518_s0 + $0x50] sm:$0xff]  ;;  %v899_v7 = vld [vmem:[%s1518_s0 + $0x8] sm:$0xff]  ;;  %s1046_s16 = smov [#allocation3]   ;;  %s754_s20 = sshll.u32 %s1527_s9, 4  ;;  %s755_s20 = int_to_ptr.hbm [resolvable:$true] %s754_s20 }
   0x7   :  { %v909_v8 = vld [vmem:[%s1518_s0 + $0x58] sm:$0xff]  ;;  %v900_v9 = vld [vmem:[%s1518_s0 + $0x10] sm:$0xff]  ;;  %v910_v10 = vld [vmem:[%s1518_s0 + $0x60] sm:$0xff]  ;;  %s752_s17 = sshll.u32 %s1046_s16, 4  ;;  %s1047_s8 = smov 16   ;;  %s753_s17 = int_to_ptr.vmem [resolvable:$true] %s752_s17 }
   0x8   :  { %240 = vmatpush.bf16.msra.mxu0 %v916_v2  ;;  %927 = vmatpush.bf16.msra.mxu3 %v916_v2  ;;  %v901_v11 = vld [vmem:[%s1518_s0 + $0x18] sm:$0xff]  ;;  %v911_v12 = vld [vmem:[%s1518_s0 + $0x68] sm:$0xff]  ;;  %v902_v13 = vld [vmem:[%s1518_s0 + $0x20] sm:$0xff]  ;;  %s1048_s21 = smov 1  }
   0x9   :  { %v912_v14 = vld [vmem:[%s1518_s0 + $0x70] sm:$0xff]  ;;  %v925_v15 = vld [vmem:[%s1523_s5 + $0x38] sm:$0xff]  ;;  %v903_v16 = vld [vmem:[%s1518_s0 + $0x28] sm:$0xff] }
   0xa   :  { %440 = vmatpush.bf16.msra.mxu1 %v925_v15  ;;  %930 = vmatpush.bf16.msra.mxu2 %v925_v15  ;;  %v913_v17 = vld [vmem:[%s1518_s0 + $0x78] sm:$0xff]  ;;  %v924_v18 = vld [vmem:[%s1523_s5 + $0x30] sm:$0xff]  ;;  %v923_v19 = vld [vmem:[%s1523_s5 + $0x28] sm:$0xff] }
   0xb   :  { %v922_v20 = vld [vmem:[%s1523_s5 + $0x20] sm:$0xff]  ;;  %v921_v21 = vld [vmem:[%s1523_s5 + $0x18] sm:$0xff]  ;;  %v904_v22 = vld [vmem:[%s1518_s0 + $0x30] sm:$0xff] }
   0xc   :  { %241 = vmatpush.bf16.msra.mxu0 %v915_v3  ;;  %928 = vmatpush.bf16.msra.mxu3 %v915_v3  ;;  %v920_v23 = vld [vmem:[%s1523_s5 + $0x10] sm:$0xff]  ;;  %v919_v24 = vld [vmem:[%s1523_s5 + $0x8] sm:$0xff]  ;;  %v918_v25 = vld [vmem:[%s1523_s5] sm:$0xff] }
   0xd   :  { %v905_v26 = vld [vmem:[%s1518_s0 + $0x38] sm:$0xff]  ;;  %v906_v27 = vld [vmem:[%s1518_s0 + $0x40] sm:$0xff]  ;;  %v907_v41 = vld [vmem:[%s1518_s0 + $0x48] sm:$0xff] }
   0xe   :  { %441 = vmatpush.bf16.msra.mxu1 %v924_v18  ;;  %931 = vmatpush.bf16.msra.mxu2 %v924_v18  ;;  %v1205_v29 = vld [vmem:[%s1522_s4] ss:$0 sm:$0xff] }
  0x10   :  { %242 = vmatpush.bf16.msra.mxu0 %v914_v4  ;;  %929 = vmatpush.bf16.msra.mxu3 %v914_v4 }
  0x12   :  { %442 = vmatpush.bf16.msra.mxu1 %v923_v19  ;;  %932 = vmatpush.bf16.msra.mxu2 %v923_v19 }
  0x13   :  { %850 = vmatmul.msk.bf16.vlgmr.msra.gmra.mxu0 %vm186_vm0, %v898_v5  ;;  %860 = vmatmul.msk.bf16.vlgmr.msra.gmra.mxu3 %vm186_vm0, %v908_v6 }
  0x16   :  { %443 = vmatpush.bf16.msra.mxu1 %v922_v20  ;;  %933 = vmatpush.bf16.msra.mxu2 %v922_v20 }
  0x1a   :  { %444 = vmatpush.bf16.msra.mxu1 %v921_v21  ;;  %934 = vmatpush.bf16.msra.mxu2 %v921_v21 }
  0x1e   :  { %445 = vmatpush.bf16.msra.mxu1 %v920_v23  ;;  %935 = vmatpush.bf16.msra.mxu2 %v920_v23 }
  0x22   :  { %446 = vmatpush.bf16.msra.mxu1 %v919_v24  ;;  %936 = vmatpush.bf16.msra.mxu2 %v919_v24 }
  0x23   :  { %851 = vmatmul.msk.bf16.gmra.mxu0 %vm186_vm0, %v899_v7  ;;  %861 = vmatmul.msk.bf16.gmra.mxu3 %vm186_vm0, %v909_v8 }
  0x26   :  { %447 = vmatpush.bf16.msra.mxu1 %v918_v25  ;;  %937 = vmatpush.bf16.msra.mxu2 %v918_v25 }
  0x33   :  { %852 = vmatmul.msk.bf16.gmra.mxu0 %vm186_vm0, %v900_v9  ;;  %862 = vmatmul.msk.bf16.gmra.mxu3 %vm186_vm0, %v910_v10 }
  0x43   :  { %853 = vmatmul.msk.bf16.gmra.mxu0 %vm186_vm0, %v901_v11  ;;  %863 = vmatmul.msk.bf16.gmra.mxu3 %vm186_vm0, %v911_v12 }
  0x53   :  { %854 = vmatmul.msk.bf16.gmra.mxu0 %vm186_vm0, %v902_v13  ;;  %864 = vmatmul.msk.bf16.gmra.mxu3 %vm186_vm0, %v912_v14 }
  0x63   :  { %855 = vmatmul.msk.bf16.gmra.mxu0 %vm186_vm0, %v903_v16  ;;  %865 = vmatmul.msk.bf16.gmra.mxu3 %vm186_vm0, %v913_v17 }
  0x73   :  { %856 = vmatmul.msk.bf16.gmra.mxu0 %vm186_vm0, %v904_v22 }
  0x83   :  { %857 = vmatmul.msk.bf16.gmra.mxu0 %vm186_vm0, %v905_v26 }
  0x90   :  { %v244_v28 = vpop.f32.mrf.mxu0 }
  0x91   :  { %v1209_v31 = vadd.f32 %v1205_v29, %v244_v28 }
  0x93   :  { %858 = vmatmul.msk.bf16.gmra.mxu0 %vm186_vm0, %v906_v27  ;;  %1535 = vst [vmem:[#allocation6_spill] sm:$0xff] %v1209_v31  ;;  %v324_v34 = vmax.f32 %v1209_v31, 0.0 }
  0x96   :  { %v294_v30 = vpop.f32.mrf.mxu3 }
  0x97   :  { %v1216_v35 = vadd.f32 %v1205_v29, %v294_v30 }
  0x98   :  { %v246_v32 = vpop.f32.mrf.mxu0 }
  0x99   :  { %v1212_v33 = vadd.f32 %v1205_v29, %v246_v32  ;;  %v344_v39 = vmax.f32 %v1216_v35, 0.0 }
  0x9b   :  { %1536 = vst [vmem:[#allocation7_spill] sm:$0xff] %v1212_v33  ;;  %v325_v36 = vmax.f32 %v1212_v33, 0.0 }
  0x9d   :  { %v356_v37 = vpack.c.bf16 %v325_v36, %v324_v34 }
  0x9e   :  { %v296_v38 = vpop.f32.mrf.mxu3 }
  0x9f   :  { %v1221_v40 = vadd.f32 %v1205_v29, %v296_v38  ;;  %448 = vmatmul.bf16.vlgmr.msra.gmra.mxu1 %v356_v37 }
  0xa0   :  { %v249_v42 = vpop.f32.mrf.mxu0 }
  0xa1   :  { %v345_v43 = vmax.f32 %v1221_v40, 0.0  ;;  %v1229_v46 = vadd.f32 %v1205_v29, %v249_v42 }
  0xa3   :  { %859 = vmatmul.msk.bf16.gmra.mxu0 %vm186_vm0, %v907_v41  ;;  %v366_v44 = vpack.c.bf16 %v345_v43, %v344_v39  ;;  %1537 = vst [vmem:[#allocation8_spill] sm:$0xff] %v1229_v46  ;;  %v326_v49 = vmax.f32 %v1229_v46, 0.0 }
  0xa5   :  { %498 = vmatmul.bf16.vlgmr.msra.gmra.mxu2 %v366_v44 }
  0xa6   :  { %v299_v45 = vpop.f32.mrf.mxu3 }
  0xa7   :  { %v1236_v50 = vadd.f32 %v1205_v29, %v299_v45 }
  0xa8   :  { %v251_v47 = vpop.f32.mrf.mxu0 }
  0xa9   :  { %v1232_v48 = vadd.f32 %v1205_v29, %v251_v47  ;;  %v346_v54 = vmax.f32 %v1236_v50, 0.0 }
  0xab   :  { %1538 = vst [vmem:[#allocation9_spill] sm:$0xff] %v1232_v48  ;;  %v327_v51 = vmax.f32 %v1232_v48, 0.0 }
  0xad   :  { %v357_v52 = vpack.c.bf16 %v327_v51, %v326_v49 }
  0xae   :  { %v301_v53 = vpop.f32.mrf.mxu3 }
  0xaf   :  { %v1241_v55 = vadd.f32 %v1205_v29, %v301_v53  ;;  %453 = vmatmul.bf16.gmra.mxu1 %v357_v52 }
  0xb0   :  { %v254_v56 = vpop.f32.mrf.mxu0 }
  0xb1   :  { %v347_v57 = vmax.f32 %v1241_v55, 0.0  ;;  %v1245_v60 = vadd.f32 %v1205_v29, %v254_v56 }
  0xb3   :  { %v367_v58 = vpack.c.bf16 %v347_v57, %v346_v54  ;;  %1539 = vst [vmem:[#allocation10_spill] sm:$0xff] %v1245_v60  ;;  %v328_v63 = vmax.f32 %v1245_v60, 0.0 }
  0xb5   :  { %503 = vmatmul.bf16.gmra.mxu2 %v367_v58 }
  0xb6   :  { %v304_v59 = vpop.f32.mrf.mxu3 }
  0xb7   :  { %v1252_v0 = vadd.f32 %v1205_v29, %v304_v59 }
  0xb8   :  { %v256_v61 = vpop.f32.mrf.mxu0 }
  0xb9   :  { %v1248_v62 = vadd.f32 %v1205_v29, %v256_v61  ;;  %v348_v4 = vmax.f32 %v1252_v0, 0.0 }
  0xbb   :  { %1540 = vst [vmem:[#allocation11_spill] sm:$0xff] %v1248_v62  ;;  %v329_v1 = vmax.f32 %v1248_v62, 0.0 }
  0xbd   :  { %v358_v2 = vpack.c.bf16 %v329_v1, %v328_v63 }
  0xbe   :  { %v306_v3 = vpop.f32.mrf.mxu3 }
  0xbf   :  { %v1257_v5 = vadd.f32 %v1205_v29, %v306_v3  ;;  %458 = vmatmul.bf16.gmra.mxu1 %v358_v2 }
  0xc0   :  { %v259_v6 = vpop.f32.mrf.mxu0 }
  0xc1   :  { %v349_v7 = vmax.f32 %v1257_v5, 0.0  ;;  %v1261_v10 = vadd.f32 %v1205_v29, %v259_v6 }
  0xc3   :  { %v368_v8 = vpack.c.bf16 %v349_v7, %v348_v4  ;;  %v330_v13 = vmax.f32 %v1261_v10, 0.0 }
  0xc5   :  { %508 = vmatmul.bf16.gmra.mxu2 %v368_v8 }
  0xc6   :  { %v309_v9 = vpop.f32.mrf.mxu3 }
  0xc7   :  { %v1268_v14 = vadd.f32 %v1205_v29, %v309_v9 }
  0xc8   :  { %v261_v11 = vpop.f32.mrf.mxu0 }
  0xc9   :  { %v1264_v12 = vadd.f32 %v1205_v29, %v261_v11  ;;  %v350_v18 = vmax.f32 %v1268_v14, 0.0 }
  0xcb   :  { %v331_v15 = vmax.f32 %v1264_v12, 0.0 }
  0xcd   :  { %v359_v16 = vpack.c.bf16 %v331_v15, %v330_v13 }
  0xce   :  { %v311_v17 = vpop.f32.mrf.mxu3 }
  0xcf   :  { %v1273_v19 = vadd.f32 %v1205_v29, %v311_v17  ;;  %463 = vmatmul.bf16.gmra.mxu1 %v359_v16 }
  0xd0   :  { %v264_v20 = vpop.f32.mrf.mxu0 }
  0xd1   :  { %v351_v21 = vmax.f32 %v1273_v19, 0.0  ;;  %v1277_v24 = vadd.f32 %v1205_v29, %v264_v20 }
  0xd3   :  { %v369_v22 = vpack.c.bf16 %v351_v21, %v350_v18  ;;  %v332_v27 = vmax.f32 %v1277_v24, 0.0 }
  0xd5   :  { %513 = vmatmul.bf16.gmra.mxu2 %v369_v22 }
  0xd6   :  { %v314_v23 = vpop.f32.mrf.mxu3 }
  0xd7   :  { %v1284_v28 = vadd.f32 %v1205_v29, %v314_v23 }
  0xd8   :  { %v266_v25 = vpop.f32.mrf.mxu0 }
  0xd9   :  { %v1280_v26 = vadd.f32 %v1205_v29, %v266_v25  ;;  %v352_v36 = vmax.f32 %v1284_v28, 0.0 }
  0xdb   :  { %v333_v30 = vmax.f32 %v1280_v26, 0.0 }
  0xdd   :  { %v360_v32 = vpack.c.bf16 %v333_v30, %v332_v27 }
  0xde   :  { %v316_v34 = vpop.f32.mrf.mxu3 }
  0xdf   :  { %v1289_v37 = vadd.f32 %v1205_v29, %v316_v34  ;;  %468 = vmatmul.bf16.gmra.mxu1 %v360_v32 }
  0xe0   :  { %v269_v38 = vpop.f32.mrf.mxu0 }
  0xe1   :  { %v353_v39 = vmax.f32 %v1289_v37, 0.0  ;;  %v1293_v43 = vadd.f32 %v1205_v29, %v269_v38 }
  0xe3   :  { %v370_v41 = vpack.c.bf16 %v353_v39, %v352_v36  ;;  %v334_v47 = vmax.f32 %v1293_v43, 0.0 }
  0xe5   :  { %518 = vmatmul.bf16.gmra.mxu2 %v370_v41 }
  0xe6   :  { %v319_v42 = vpop.f32.mrf.mxu3 }
  0xe7   :  { %v1300_v49 = vadd.f32 %v1205_v29, %v319_v42 }
  0xe8   :  { %v271_v44 = vpop.f32.mrf.mxu0 }
  0xe9   :  { %v1296_v45 = vadd.f32 %v1205_v29, %v271_v44  ;;  %v354_v54 = vmax.f32 %v1300_v49, 0.0 }
  0xeb   :  { %v335_v51 = vmax.f32 %v1296_v45, 0.0 }
  0xed   :  { %v361_v52 = vpack.c.bf16 %v335_v51, %v334_v47 }
  0xee   :  { %v321_v53 = vpop.f32.mrf.mxu3 }
  0xef   :  { %v1305_v56 = vadd.f32 %v1205_v29, %v321_v53  ;;  %473 = vmatmul.bf16.gmra.mxu1 %v361_v52 }
  0xf0   :  { %v274_v57 = vpop.f32.mrf.mxu0 }
  0xf1   :  { %v355_v58 = vmax.f32 %v1305_v56, 0.0  ;;  %v1309_v61 = vadd.f32 %v1205_v29, %v274_v57 }
  0xf3   :  { %v371_v59 = vpack.c.bf16 %v355_v58, %v354_v54  ;;  %v336_v2 = vmax.f32 %v1309_v61, 0.0 }
  0xf5   :  { %523 = vmatmul.bf16.gmra.mxu2 %v371_v59 }
  0xf8   :  { %v276_v63 = vpop.f32.mrf.mxu0 }
  0xf9   :  { %v1312_v1 = vadd.f32 %v1205_v29, %v276_v63 }
  0xfb   :  { %v337_v3 = vmax.f32 %v1312_v1, 0.0 }
  0xfd   :  { %v362_v4 = vpack.c.bf16 %v337_v3, %v336_v2 }
  0xff   :  { %478 = vmatmul.bf16.gmra.mxu1 %v362_v4 }
 0x100   :  { %v279_v6 = vpop.f32.mrf.mxu0 }
 0x101   :  { %v1317_v7 = vadd.f32 %v1205_v29, %v279_v6 }
 0x103   :  { %v338_v11 = vmax.f32 %v1317_v7, 0.0 }
 0x108   :  { %v281_v8 = vpop.f32.mrf.mxu0 }
 0x109   :  { %v1320_v9 = vadd.f32 %v1205_v29, %v281_v8 }
 0x10b   :  { %v339_v13 = vmax.f32 %v1320_v9, 0.0 }
 0x10d   :  { %v363_v15 = vpack.c.bf16 %v339_v13, %v338_v11 }
 0x10f   :  { %483 = vmatmul.bf16.gmra.mxu1 %v363_v15 }
 0x110   :  { %v284_v16 = vpop.f32.mrf.mxu0 }
 0x111   :  { %v1325_v17 = vadd.f32 %v1205_v29, %v284_v16 }
 0x113   :  { %v340_v20 = vmax.f32 %v1325_v17, 0.0 }
 0x118   :  { %v286_v18 = vpop.f32.mrf.mxu0 }
 0x119   :  { %v1329_v21 = vadd.f32 %v1205_v29, %v286_v18 }
 0x11b   :  { %v341_v22 = vmax.f32 %v1329_v21, 0.0 }
 0x11c   :  { %v1332_v23 = vpop.f32.mrf.mxu1 }
 0x11d   :  { %v364_v25 = vpack.c.bf16 %v341_v22, %v340_v20  ;;  %v1371_v20 = vld [vmem:[%s1524_s6] ss:$0 sm:$0xff] }
 0x11f   :  { %488 = vmatmul.bf16.gmra.mxu1 %v364_v25 }
 0x120   :  { %v289_v27 = vpop.f32.mrf.mxu0 }
 0x121   :  { %v1337_v32 = vadd.f32 %v1205_v29, %v289_v27  ;;  %v1377_v27 = vld [vmem:[%s1519_s1 + $0x1] ss:$0 sm:$0xff] }
 0x123   :  { %v342_v38 = vmax.f32 %v1337_v32, 0.0 }
 0x124   :  { %v1334_v30 = vpop.f32.mrf.mxu1 }
 0x128   :  { %v291_v34 = vpop.f32.mrf.mxu0  ;;  %v1339_v36 = vpop.f32.mrf.mxu2 }
 0x129   :  { %v1343_v39 = vadd.f32 %v1205_v29, %v291_v34 }
 0x12b   :  { %v343_v41 = vmax.f32 %v1343_v39, 0.0 }
 0x12c   :  { %v1346_v42 = vpop.f32.mrf.mxu1 }
 0x12d   :  { %v365_v44 = vpack.c.bf16 %v343_v41, %v342_v38 }
 0x12f   :  { %493 = vmatmul.bf16.gmra.mxu1 %v365_v44 }
 0x130   :  { %v1348_v47 = vpop.f32.mrf.mxu2 }
 0x134   :  { %v1350_v51 = vpop.f32.mrf.mxu1 }
 0x138   :  { %v1352_v52 = vpop.f32.mrf.mxu2 }
 0x13c   :  { %v1354_v53 = vpop.f32.mrf.mxu1 }
 0x140   :  { %v506_v54 = vpop.f32.mrf.mxu2 }
 0x144   :  { %v1356_v57 = vpop.f32.mrf.mxu1 }
 0x148   :  { %v509_v58 = vpop.f32.mrf.mxu2 }
 0x14c   :  { %v1358_v29 = vpop.f32.mrf.mxu1 }
 0x150   :  { %v511_v59 = vpop.f32.mrf.mxu2 }
 0x154   :  { %v1360_v63 = vpop.f32.mrf.mxu1 }
 0x158   :  { %v514_v2 = vpop.f32.mrf.mxu2 }
 0x15c   :  { %v1362_v3 = vpop.f32.mrf.mxu1 }
 0x160   :  { %v516_v4 = vpop.f32.mrf.mxu2 }
 0x161   :  { %v517_v62 = vadd.f32 %v1371_v20, %v516_v4  ;;  %v510_v4 = vadd.f32 %v1371_v20, %v509_v58 }
 0x164   :  { %v1364_v6 = vpop.f32.mrf.mxu1 }
 0x168   :  { %v519_v8 = vpop.f32.mrf.mxu2 }
 0x169   :  { %v520_v33 = vadd.f32 %v1371_v20, %v519_v8  ;;  %v512_v8 = vadd.f32 %v1371_v20, %v511_v59 }
 0x16b   :  { %v562_v59 = vadd.f32 %v1377_v27, %v512_v8 }
 0x16c   :  { %v1366_v11 = vpop.f32.mrf.mxu1 }
 0x170   :  { %v521_v13 = vpop.f32.mrf.mxu2 }
 0x171   :  { %v522_v31 = vadd.f32 %v1371_v20, %v521_v13  ;;  %v564_v13 = vadd.f32 %v1377_v27, %v517_v62 }
 0x174   :  { %v476_v15 = vpop.f32.mrf.mxu1 }
 0x178   :  { %v524_v16 = vpop.f32.mrf.mxu2 }
 0x179   :  { %v525_v22 = vadd.f32 %v1371_v20, %v524_v16  ;;  %v566_v16 = vadd.f32 %v1377_v27, %v522_v31 }
 0x17b   :  { %v567_v38 = vadd.f32 %v1377_v27, %v525_v22  ;;  %v515_v22 = vadd.f32 %v1371_v20, %v514_v2 }
 0x17c   :  { %v479_v18 = vpop.f32.mrf.mxu1 }
 0x17d   :  { %v563_v31 = vadd.f32 %v1377_v27, %v515_v22  ;;  %v507_v22 = vadd.f32 %v1371_v20, %v506_v54  ;;  %v480_v58 = vadd.f32 %v1371_v20, %v479_v18  ;;  %v477_v54 = vadd.f32 %v1371_v20, %v476_v15 }
 0x180   :  { %v526_v25 = vpop.f32.mrf.mxu2 }
 0x181   :  { %v527_v34 = vadd.f32 %v1371_v20, %v526_v25  ;;  %v565_v25 = vadd.f32 %v1377_v27, %v520_v33 }
 0x183   :  { %v568_v41 = vadd.f32 %v1377_v27, %v527_v34 }
 0x184   :  { %v481_v44 = vpop.f32.mrf.mxu1 }
 0x185   :  { %947 = vtanh.f32 %v568_v41  ;;  %v482_v41 = vadd.f32 %v1371_v20, %v481_v44  ;;  %v505_v44 = vadd.f32 %v1371_v20, %v1352_v52  ;;  %v475_v52 = vadd.f32 %v1371_v20, %v1366_v11 }
 0x186   :  { %949 = vtanh.f32 %v567_v38 }
 0x187   :  { %951 = vtanh.f32 %v566_v16 }
 0x188   :  { %953 = vtanh.f32 %v565_v25 }
 0x189   :  { %955 = vtanh.f32 %v564_v13 }
 0x18a   :  { %957 = vtanh.f32 %v563_v31 }
 0x18b   :  { %v948_v46 = vpop.eup %947 }
 0x18c   :  { %v484_v48 = vpop.f32.mrf.mxu1  ;;  %629 = vmatpush.xpose.msrb.mxu3 %v948_v46  ;;  %v950_v60 = vpop.eup %949  ;;  %v1394_v46 = vld [vmem:[%s1519_s1] ss:$0 sm:$0xff] }
 0x18d   :  { %v952_v34 = vpop.eup %951  ;;  %v485_v33 = vadd.f32 %v1371_v20, %v484_v48  ;;  %v561_v48 = vadd.f32 %v1377_v27, %v510_v4 }
 0x18e   :  { %v954_v2 = vpop.eup %953 }
 0x18f   :  { %v551_v16 = vadd.f32 %v1394_v46, %v485_v33  ;;  %v956_v25 = vpop.eup %955  ;;  %v549_v33 = vadd.f32 %v1394_v46, %v480_v58 }
 0x190   :  { %630 = vmatpush.xpose.msrb.mxu3 %v950_v60  ;;  %v958_v8 = vpop.eup %957 }
 0x194   :  { %v486_v38 = vpop.f32.mrf.mxu1  ;;  %631 = vmatpush.xpose.msrb.mxu3 %v952_v34  ;;  %v550_v34 = vadd.f32 %v1394_v46, %v482_v41 }
 0x195   :  { %v487_v60 = vadd.f32 %v1371_v20, %v486_v38  ;;  %v560_v38 = vadd.f32 %v1377_v27, %v507_v22  ;;  %v547_v22 = vadd.f32 %v1394_v46, %v475_v52 }
 0x197   :  { %v552_v62 = vadd.f32 %v1394_v46, %v487_v60 }
 0x198   :  { %632 = vmatpush.xpose.msrb.mxu3 %v954_v2  ;;  %v502_v2 = vadd.f32 %v1371_v20, %v1348_v47  ;;  %v472_v47 = vadd.f32 %v1371_v20, %v1364_v6  ;;  %v467_v6 = vadd.f32 %v1371_v20, %v1360_v63 }
 0x199   :  { %959 = vtanh.f32 %v552_v62  ;;  %v559_v62 = vadd.f32 %v1377_v27, %v505_v44 }
 0x19a   :  { %961 = vtanh.f32 %v562_v59  ;;  %v548_v59 = vadd.f32 %v1394_v46, %v477_v54 }
 0x19b   :  { %963 = vtanh.f32 %v551_v16  ;;  %v500_v16 = vadd.f32 %v1371_v20, %v1339_v36  ;;  %v470_v36 = vadd.f32 %v1371_v20, %v1362_v3  ;;  %v544_v3 = vadd.f32 %v1394_v46, %v467_v6 }
 0x19c   :  { %v1405_v13 = vpop.f32.mrf.mxu1  ;;  %633 = vmatpush.xpose.msrb.mxu3 %v956_v25  ;;  %965 = vtanh.f32 %v561_v48  ;;  %v558_v25 = vadd.f32 %v1377_v27, %v502_v2 }
 0x19d   :  { %967 = vtanh.f32 %v550_v34  ;;  %v557_v58 = vadd.f32 %v1377_v27, %v500_v16 }
 0x19e   :  { %969 = vtanh.f32 %v560_v38  ;;  %v545_v38 = vadd.f32 %v1394_v46, %v470_v36 }
 0x19f   :  { %v960_v31 = vpop.eup %959  ;;  %971 = vtanh.f32 %v549_v33 }
 0x1a0   :  { %609 = vmatpush.xpose.msrb.mxu2 %v960_v31  ;;  %634 = vmatpush.xpose.msrb.mxu3 %v958_v8  ;;  %v962_v60 = vpop.eup %961  ;;  %973 = vtanh.f32 %v559_v62  ;;  %v546_v8 = vadd.f32 %v1394_v46, %v472_v47  ;;  %v460_v47 = vadd.f32 %v1371_v20, %v1354_v53  ;;  %v457_v53 = vadd.f32 %v1371_v20, %v1350_v51 }
 0x1a1   :  { %v964_v18 = vpop.eup %963  ;;  %975 = vtanh.f32 %v548_v59  ;;  %v452_v51 = vadd.f32 %v1371_v20, %v1334_v30 }
 0x1a2   :  { %v966_v15 = vpop.eup %965  ;;  %977 = vtanh.f32 %v558_v25  ;;  %v541_v36 = vadd.f32 %v1394_v46, %v460_v47  ;;  %v540_v6 = vadd.f32 %v1394_v46, %v457_v53 }
 0x1a3   :  { %v968_v41 = vpop.eup %967  ;;  %979 = vtanh.f32 %v547_v22 }
 0x1a4   :  { %v491_v4 = vpop.f32.mrf.mxu1  ;;  %610 = vmatpush.xpose.msrb.mxu2 %v964_v18  ;;  %635 = vmatpush.xpose.msrb.mxu3 %v962_v60  ;;  %v970_v11 = vpop.eup %969  ;;  %981 = vtanh.f32 %v557_v58  ;;  %v465_v60 = vadd.f32 %v1371_v20, %v1358_v29  ;;  %v602_v58 = vld [vmem:[#allocation2] sm:$0x1] }
 0x1a5   :  { %v972_v48 = vpop.eup %971  ;;  %983 = vtanh.f32 %v546_v8  ;;  %v492_v29 = vadd.f32 %v1371_v20, %v491_v4 }
 0x1a6   :  { %v974_v31 = vpop.eup %973  ;;  %985 = vtanh.f32 %v545_v38 }
 0x1a7   :  { %v976_v44 = vpop.eup %975  ;;  %987 = vtanh.f32 %v544_v3  ;;  %v450_v3 = vadd.f32 %v1371_v20, %v1332_v23 }
 0x1a8   :  { %611 = vmatpush.xpose.msrb.mxu2 %v968_v41  ;;  %636 = vmatpush.xpose.msrb.mxu3 %v966_v15  ;;  %v978_v54 = vpop.eup %977  ;;  %v462_v15 = vadd.f32 %v1371_v20, %v1356_v57  ;;  %v543_v41 = vadd.f32 %v1394_v46, %v465_v60  ;;  %v490_v57 = vadd.f32 %v1371_v20, %v1405_v13 }
 0x1a9   :  { %v980_v33 = vpop.eup %979 }
 0x1aa   :  { %v982_v62 = vpop.eup %981  ;;  %v542_v22 = vadd.f32 %v1394_v46, %v462_v15  ;;  %v553_v8 = vadd.f32 %v1377_v27, %v490_v57 }
 0x1ab   :  { %v984_v52 = vpop.eup %983 }
 0x1ac   :  { %v494_v34 = vpop.f32.mrf.mxu1  ;;  %612 = vmatpush.xpose.msrb.mxu2 %v972_v48  ;;  %637 = vmatpush.xpose.msrb.mxu3 %v970_v11  ;;  %v986_v25 = vpop.eup %985  ;;  %v554_v11 = vadd.f32 %v1377_v27, %v492_v29  ;;  %v1045_v48 = vmov 0  }
 0x1ad   :  { %v495_v2 = vadd.f32 %v1371_v20, %v494_v34  ;;  %942 = vset.pattern.permute.xlu0 %v1045_v48  ;;  %v988_v4 = vpop.eup %987 }
 0x1ae   :  { %605 = vperm.xlu0 %942, %v602_v58  }
 0x1af   :  { %v555_v16 = vadd.f32 %v1377_v27, %v495_v2  ;;  %v537_v2 = vadd.f32 %v1394_v46, %v450_v3 }
 0x1b0   :  { %613 = vmatpush.xpose.msrb.mxu2 %v976_v44  ;;  %638 = vmatpush.xpose.msrb.mxu3 %v974_v31  ;;  %v455_v44 = vadd.f32 %v1371_v20, %v1346_v42  ;;  %v601_v42 = vld [vmem:[%s1525_s7] sm:$0x1] }
 0x1b4   :  { %v496_v18 = vpop.f32.mrf.mxu1  ;;  %614 = vmatpush.xpose.msrb.mxu2 %v980_v33  ;;  %639 = vmatpush.xpose.msrb.mxu3 %v978_v54 }
 0x1b5   :  { %v497_v63 = vadd.f32 %v1371_v20, %v496_v18  ;;  %v538_v18 = vadd.f32 %v1394_v46, %v452_v51 }
 0x1b7   :  { %v556_v59 = vadd.f32 %v1377_v27, %v497_v63  ;;  %v539_v27 = vadd.f32 %v1394_v46, %v455_v44 }
 0x1b8   :  { %615 = vmatpush.xpose.msrb.mxu2 %v984_v52  ;;  %640 = vmatpush.xpose.msrb.mxu3 %v982_v62 }
 0x1b9   :  { %989 = vtanh.f32 %v556_v59 }
 0x1ba   :  { %991 = vtanh.f32 %v543_v41 }
 0x1bb   :  { %993 = vtanh.f32 %v555_v16 }
 0x1bc   :  { %616 = vmatpush.xpose.msrb.mxu2 %v986_v25  ;;  %995 = vtanh.f32 %v542_v22 }
 0x1bd   :  { %997 = vtanh.f32 %v554_v11 }
 0x1be   :  { %999 = vtanh.f32 %v541_v36 }
 0x1bf   :  { %v990_v34 = vpop.eup %989  ;;  %1001 = vtanh.f32 %v553_v8 }
 0x1c0   :  { %617 = vmatpush.xpose.msrb.mxu2 %v988_v4  ;;  %641 = vmatpush.xpose.msrb.mxu3 %v990_v34  ;;  %v992_v13 = vpop.eup %991  ;;  %1003 = vtanh.f32 %v540_v6 }
 0x1c1   :  { %v994_v31 = vpop.eup %993  ;;  %1005 = vtanh.f32 %v539_v27 }
 0x1c2   :  { %v996_v38 = vpop.eup %995  ;;  %1007 = vtanh.f32 %v538_v18 }
 0x1c3   :  { %v998_v54 = vpop.eup %997  ;;  %1009 = vtanh.f32 %v537_v2 }
 0x1c4   :  { %618 = vmatpush.xpose.msrb.mxu2 %v992_v13  ;;  %642 = vmatpush.xpose.msrb.mxu3 %v994_v31  ;;  %v1000_v33 = vpop.eup %999 }
 0x1c5   :  { %v1002_v60 = vpop.eup %1001 }
 0x1c6   :  { %v1004_v30 = vpop.eup %1003 }
 0x1c7   :  { %v1006_v63 = vpop.eup %1005 }
 0x1c8   :  { %619 = vmatpush.xpose.msrb.mxu2 %v996_v38  ;;  %643 = vmatpush.xpose.msrb.mxu3 %v998_v54  ;;  %v1008_v23 = vpop.eup %1007 }
 0x1cc   :  { %620 = vmatpush.xpose.msrb.mxu2 %v1000_v33  ;;  %644 = vmatpush.xpose.msrb.mxu3 %v1002_v60 }
 0x1cf   :  { %645 = vmatmul.f32.vlgmr.msrb.gmra.mxu3 %v601_v42 }
 0x1d0   :  { %726 = vmatpush.msra.mxu3 %v1305_v56  ;;  %621 = vmatpush.xpose.msrb.mxu2 %v1004_v30 }
 0x1d2   :  { %727 = vmatpush.msra.mxu3 %v1300_v49  ;;  %v1010_v49 = vpop.eup %1009 }
 0x1d4   :  { %728 = vmatpush.msra.mxu3 %v1289_v37  ;;  %622 = vmatpush.xpose.msrb.mxu2 %v1006_v63  ;;  %v649_v37 = vld [vmem:[%s1520_s2] sm:$0x1] }
 0x1d5   :  { %vm651_vm3 = vcmp.eq.s32.totalorder %v649_v37, 0 }
 0x1d6   :  { %729 = vmatpush.msra.mxu3 %v1284_v28 }
 0x1d8   :  { %730 = vmatpush.msra.mxu3 %v1273_v19  ;;  %623 = vmatpush.xpose.msrb.mxu2 %v1008_v23 }
 0x1da   :  { %731 = vmatpush.msra.mxu3 %v1268_v14 }
 0x1dc   :  { %732 = vmatpush.msra.mxu3 %v1257_v5  ;;  %624 = vmatpush.xpose.msrb.mxu2 %v1010_v49  ;;  %v1546_v5 = vld [vmem:[#allocation6_spill] sm:$0xff] }
 0x1de   :  { %733 = vmatpush.msra.mxu3 %v1252_v0  ;;  %v1545_v0 = vld [vmem:[#allocation7_spill] sm:$0xff] }
 0x1df   :  { %625 = vmatmul.f32.vlgmr.msrb.gmra.mxu2 %v601_v42 }
 0x1e0   :  { %706 = vmatpush.msra.mxu2 %v1320_v9  ;;  %734 = vmatpush.msra.mxu3 %v1241_v55  ;;  %v1544_v55 = vld [vmem:[#allocation8_spill] sm:$0xff] }
 0x1e2   :  { %707 = vmatpush.msra.mxu2 %v1317_v7  ;;  %735 = vmatpush.msra.mxu3 %v1236_v50  ;;  %v1543_v50 = vld [vmem:[#allocation9_spill] sm:$0xff] }
 0x1e4   :  { %708 = vmatpush.msra.mxu2 %v1312_v1  ;;  %736 = vmatpush.msra.mxu3 %v1221_v40  ;;  %v1542_v40 = vld [vmem:[#allocation10_spill] sm:$0xff] }
 0x1e6   :  { %709 = vmatpush.msra.mxu2 %v1309_v61  ;;  %737 = vmatpush.msra.mxu3 %v1216_v35  ;;  %v1541_v35 = vld [vmem:[#allocation11_spill] sm:$0xff] }
 0x1e8   :  { %710 = vmatpush.msra.mxu2 %v1296_v45  ;;  %738 = vmatpush.msra.mxu3 %v1343_v39 }
 0x1ea   :  { %711 = vmatpush.msra.mxu2 %v1293_v43  ;;  %739 = vmatpush.msra.mxu3 %v1337_v32 }
 0x1ec   :  { %712 = vmatpush.msra.mxu2 %v1280_v26  ;;  %740 = vmatpush.msra.mxu3 %v1329_v21 }
 0x1ee   :  { %713 = vmatpush.msra.mxu2 %v1277_v24  ;;  %741 = vmatpush.msra.mxu3 %v1325_v17 }
 0x1f0   :  { %714 = vmatpush.msra.mxu2 %v1264_v12  ;;  %v650_v12 = vld [vmem:[%s1520_s2 + $0x1] sm:$0x1] }
 0x1f1   :  { %vm652_vm1 = vcmp.eq.s32.totalorder %v650_v12, 0 }
 0x1f2   :  { %715 = vmatpush.msra.mxu2 %v1261_v10 }
 0x1f4   :  { %716 = vmatpush.msra.mxu2 %v1541_v35 }
 0x1f6   :  { %717 = vmatpush.msra.mxu2 %v1542_v40 }
 0x1f8   :  { %718 = vmatpush.msra.mxu2 %v1543_v50 }
 0x1fa   :  { %719 = vmatpush.msra.mxu2 %v1544_v55 }
 0x1fc   :  { %720 = vmatpush.msra.mxu2 %v1545_v0 }
 0x1fe   :  { %721 = vmatpush.msra.mxu2 %v1546_v5 }
 0x220   :  { %v606_v14 = vpop.permute.xlu0 %605 }
 0x221   :  { %v608_v19 = vperm.slane %v606_v14, 0 }
 0x252   :  { %v646_v24 = vpop.f32.mrf.mxu3 }
 0x253   :  { %v647_v10 = vadd.f32 %v646_v24, %v608_v19 }
 0x255   :  { %v654_v26 = vsel %vm652_vm1, -inf, %v647_v10 }
 0x256   :  { %v659_v28 = vsel %vm655_vm2, %v654_v26, -inf }
 0x257   :  { %660 = vmax.xlane.f32.xlu1 %v659_v28 }
 0x262   :  { %v626_v43 = vpop.f32.mrf.mxu2 }
 0x263   :  { %v627_v45 = vadd.f32 %v626_v43, %v608_v19 }
 0x265   :  { %v653_v56 = vsel %vm651_vm3, -inf, %v627_v45 }
 0x266   :  { %v656_v61 = vsel %vm655_vm2, %v653_v56, -inf }
 0x267   :  { %657 = vmax.xlane.f32.xlu0 %v656_v61 }
 0x2ca   :  { %v661_v1 = vpop.xlane.xlu1 %660 }
 0x2cb   :  { %v663_v7 = vsub.f32 %v654_v26, %v661_v1 }
 0x2cd   :  { %v666_v9 = vmul.f32 1.442695, %v663_v7 }
 0x2cf   :  { %1011 = vpow2.f32 %v666_v9 }
 0x2d5   :  { %v1012_v17 = vpop.eup %1011 }
 0x2d6   :  { %v671_v21 = vsel %vm655_vm2, %v1012_v17, 0.0 }
 0x2d7   :  { %672 = vadd.xlane.f32.xlu2 %v671_v21 }
 0x2da   :  { %v658_v32 = vpop.xlane.xlu0 %657 }
 0x2db   :  { %v662_v39 = vsub.f32 %v653_v56, %v658_v32 }
 0x2dd   :  { %v664_v20 = vmul.f32 1.442695, %v662_v39 }
 0x2df   :  { %1013 = vpow2.f32 %v664_v20 }
 0x2e5   :  { %v1014_v46 = vpop.eup %1013 }
 0x2e6   :  { %v668_v62 = vsel %vm655_vm2, %v1014_v46, 0.0 }
 0x2e7   :  { %669 = vadd.xlane.f32.xlu1 %v668_v62 }
 0x34a   :  { %v673_v52 = vpop.xlane.xlu2 %672 }
 0x34b   :  { %1015 = vrcp.f32 %v673_v52  ;;  %v700_v16 = vand.u32 2147483648, %v673_v52  ;;  %v698_v25 = vand.u32 2147483647, %v673_v52  ;;  %vm694_vm5 = vweird.f32 %v673_v52 }
 0x34d   :  { %v701_v57 = vor.u32 1.1754944e-38, %v700_v16  ;;  %vm699_vm7 = vcmp.eq.f32.partialorder %v698_v25, 8.507059e+37 }
 0x351   :  { %v1016_v59 = vpop.eup %1015 }
 0x352   :  { %v690_v15 = vmul.f32 %v1016_v59, %v673_v52  ;;  %vm695_vm4 = vweird.f32 %v1016_v59 }
 0x353   :  { %vm696_vm6 = vmor %vm694_vm5, %vm695_vm4 }
 0x354   :  { %v691_v41 = vsub.f32 1.0, %v690_v15 }
 0x356   :  { %v692_v29 = vmul.f32 %v1016_v59, %v691_v41 }
 0x358   :  { %v693_v47 = vadd.f32 %v1016_v59, %v692_v29 }
 0x35a   :  { %v697_v22 = vsel %vm696_vm6, %v1016_v59, %v693_v47  ;;  %v670_v11 = vpop.xlane.xlu1 %669 }
 0x35b   :  { %1017 = vrcp.f32 %v670_v11  ;;  %v702_v48 = vsel %vm699_vm7, %v701_v57, %v697_v22  ;;  %v685_v53 = vand.u32 2147483648, %v670_v11  ;;  %v683_v13 = vand.u32 2147483647, %v670_v11 }
 0x35c   :  { %v703_v4 = vmul.f32 %v1012_v17, %v702_v48  ;;  %vm679_vm9 = vweird.f32 %v670_v11 }
 0x35d   :  { %v686_v44 = vor.u32 1.1754944e-38, %v685_v53  ;;  %vm684_vm11 = vcmp.eq.f32.partialorder %v683_v13, 8.507059e+37 }
 0x35e   :  { %705 = vst [vmem:[%s1528_s10 + $0x1] sm:$0x1] %v703_v4  ;;  %742 = vmatmul.f32.vlgmr.msra.gmra.mxu3 %v703_v4 }
 0x361   :  { %v1018_v58 = vpop.eup %1017 }
 0x362   :  { %v675_v34 = vmul.f32 %v1018_v58, %v670_v11  ;;  %vm680_vm8 = vweird.f32 %v1018_v58 }
 0x363   :  { %vm681_vm10 = vmor %vm679_vm9, %vm680_vm8 }
 0x364   :  { %v676_v36 = vsub.f32 1.0, %v675_v34 }
 0x366   :  { %v677_v8 = vmul.f32 %v1018_v58, %v676_v36 }
 0x368   :  { %v678_v31 = vadd.f32 %v1018_v58, %v677_v8 }
 0x36a   :  { %v682_v6 = vsel %vm681_vm10, %v1018_v58, %v678_v31 }
 0x36b   :  { %v687_v38 = vsel %vm684_vm11, %v686_v44, %v682_v6 }
 0x36c   :  { %v688_v54 = vmul.f32 %v1014_v46, %v687_v38 }
 0x36e   :  { %704 = vst [vmem:[%s1528_s10] sm:$0x1] %v688_v54  ;;  %722 = vmatmul.f32.vlgmr.msra.gmra.mxu2 %v688_v54 }
 0x3e1   :  { %v743_v51 = vpop.f32.mrf.mxu3 }
 0x3e2   :  { %747 = vst [vmem:[#allocation3 + $0x1] sm:$0x1] %v743_v51 }
 0x3f1   :  { %v723_v27 = vpop.f32.mrf.mxu2 }
 0x3f2   :  { %746 = vst [vmem:[#allocation3] sm:$0x1] %v723_v27 }
 0x3f3   :  { %760 = dma.vmem_to_hbm [thread:$0]  %s753_s17, 32, %s755_s20, [#allocation4], %s1047_s8, %s1047_s8, %s1048_s21  }
 0x3f4   :  { %1043 = dma.done.wait [#allocation4], 32  }
 0x3f5   :  { %1044 = vsyncadd [#allocation4], 4294967264 }
 0x3f6   :  { %769 = vsyncpa [#allocation4], 1 }

</bundles_post_ra>
